<compile_context>
chip_gen: v6e
topology: v6e:2x2x1
jax: 0.10.0
libtpu: 0.0.40
codegen_flags: <defaults>
</compile_context>

<pallas_src>
import math

import jax
import jax.numpy as jnp
from jax.experimental import pallas as pl
from jax.experimental.pallas import tpu as pltpu


def _expker_kernel(rx_ref, rz_ref, x_ref, z_ref, o_ref):
    # rx_ref: (tm, 1)  f32 = 0.5*p*||x_i||^2 - log(amplitude)   (bias folded in)
    # rz_ref: (1, tn)  f32 = 0.5*p*||z_j||^2
    # x_ref : (tm, D)      = X * p_scale   (so the dot yields p*<x,z>)
    # z_ref : (tn, D)      = Z
    # o_ref : (tm, tn)     = amplitude * exp(-0.5*p*sqdist), cast to o_ref.dtype
    cross = jax.lax.dot_general(
        x_ref[...], z_ref[...], (((1,), (1,)), ((), ())),
        preferred_element_type=jnp.float32)              # (tm, tn) on the MXU
    o_ref[...] = jnp.exp(cross - rx_ref[...] - rz_ref[...]).astype(o_ref.dtype)


def _round_down(x, m):
    return max(m, (x // m) * m)


def _round_up(x, m):
    return -(-x // m) * m


def _working_set_bytes(tm, tn, D, out_bytes, in_bytes):
    # Depth-2 pipelined per-step footprint: output tile + both full-D operand
    # strips + the two tiny row-norm vectors, all double-buffered.
    return 2 * (tm * tn * out_bytes + (tm + tn) * D * in_bytes + (tm + tn) * 4)


def exponentiation_kernel_pallas(X, Z, p_scale_, amplitude_scale_, *,
                                 tm=1024, tn=2048,
                                 out_dtype=jnp.float32,
                                 cast_inputs_bf16=None):
    """Equivalent of ExponentiationKernel.forward(X, Z).

    X: (N, D), Z: (M, D).
    p_scale_ = log(p_scale), amplitude_scale_ = log(amplitude_scale).
    Returns K: (N, M) in `out_dtype` (f32 matches the reference; bf16 is the
    fast writeback path).
    """
    X = X.astype(jnp.float32)
    Z = Z.astype(jnp.float32)
    N, D = X.shape
    M, _ = Z.shape

    # bf16 operands only pay once the (tm,D)/(tn,D) strips matter.
    if cast_inputs_bf16 is None:
        cast_inputs_bf16 = D >= 256
    in_dtype = jnp.bfloat16 if cast_inputs_bf16 else jnp.float32
    in_bytes = 2 if cast_inputs_bf16 else 4
    out_bytes = jnp.dtype(out_dtype).itemsize

    # ---- VMEM budget (chip-aware; v7x has only 64 MiB physical per TC) ----
    vmem_cap = 64 << 20                      # conservative fallback == v7x
    try:
        vmem_cap = int(pltpu.get_tpu_info().vmem_capacity_bytes)
    except Exception:
        pass
    vmem_limit = min(64 << 20, max(32 << 20, (vmem_cap * 3) // 4))
    tile_budget = vmem_limit - (8 << 20)     # headroom for compiler scratch

    # ---- tile selection (block == full extent is always legal; otherwise
    #      sublane dim must be a multiple of 8, lane dim a multiple of 128) ----
    tm = min(tm, N)
    tn = min(tn, M)
    if tm < N:
        tm = _round_down(tm, 8)
    if tn < M:
        tn = _round_down(tn, 128)

    # D-aware shrink: tn first (keep >=512 lanes so stores stay wide), then tm.
    while _working_set_bytes(tm, tn, D, out_bytes, in_bytes) > tile_budget:
        if tn > 512:
            tn = _round_down(tn // 2, 128)
        elif tm > 64:
            tm = _round_down(tm // 2, 8)
        elif tn > 128:
            tn = _round_down(tn // 2, 128)
        elif tm > 8:
            tm = _round_down(tm // 2, 8)
        else:
            break

    # Guarantee >=2 blocks along a "parallel" axis so v7x's 2 TensorCores both
    # get work (no-op on v5e/v6e). Prefer splitting rows: keeps the output
    # store full-M lane-dense.
    if pl.cdiv(N, tm) * pl.cdiv(M, tn) == 1:
        if N > 8:
            tm = _round_up(pl.cdiv(N, 2), 8)
        elif M > 128:
            tn = _round_up(pl.cdiv(M, 2), 128)

    # ---- tiny precomputed row-norm inputs; scale/bias folded in ----
    p = jnp.exp(jnp.asarray(p_scale_, jnp.float32))
    c = 0.5 * p
    rx = (c * jnp.sum(X * X, axis=1, keepdims=True)
          - jnp.asarray(amplitude_scale_, jnp.float32)).astype(jnp.float32)   # (N,1)
    rz = (c * jnp.sum(Z * Z, axis=1, keepdims=True)).T.astype(jnp.float32)    # (1,M)
    Xc = (X * p).astype(in_dtype)                                             # (N,D)
    Zc = Z.astype(in_dtype)                                                   # (M,D)

    grid = (pl.cdiv(N, tm), pl.cdiv(M, tn))

    cost = pl.CostEstimate(
        flops=2 * N * M * D,
        transcendentals=N * M,
        bytes_accessed=N * M * out_bytes + (N + M) * D * in_bytes + (N + M) * 4)

    return pl.pallas_call(
        _expker_kernel,
        out_shape=jax.ShapeDtypeStruct((N, M), out_dtype),
        grid=grid,
        in_specs=[
            pl.BlockSpec((tm, 1), lambda i, j: (i, 0)),   # rx
            pl.BlockSpec((1, tn), lambda i, j: (0, j)),   # rz
            pl.BlockSpec((tm, D), lambda i, j: (i, 0)),   # Xc
            pl.BlockSpec((tn, D), lambda i, j: (j, 0)),   # Zc
        ],
        out_specs=pl.BlockSpec((tm, tn), lambda i, j: (i, j)),
        compiler_params=pltpu.CompilerParams(
            dimension_semantics=("parallel", "parallel"),
            vmem_limit_bytes=vmem_limit),
        cost_estimate=cost,
    )(rx, rz, Xc, Zc)


def exponentiation_kernel_reference(X, Z, p_scale_, amplitude_scale_):
    """Pure-JAX reference mirroring the (completed) PyTorch forward."""
    amp = jnp.exp(amplitude_scale_)
    p = jnp.exp(p_scale_)
    Xsq = jnp.sum(X ** 2, axis=1, keepdims=True)
    Zsq = jnp.sum(Z ** 2, axis=1, keepdims=True)
    sqdist = Xsq + Zsq.T - 2.0 * X @ Z.T
    return amp * jnp.exp(-0.5 * p * sqdist)


if __name__ == "__main__":
    # Deterministic parameters (module __init__ stores log-scale scalars).
    p_scale_ = jnp.float32(math.log(0.7))          # p_scale = 0.7
    amplitude_scale_ = jnp.float32(math.log(2.0))  # amplitude_scale = 2.0

    key = jax.random.PRNGKey(0)
    kx, kz = jax.random.split(key)
    N, M, D = 256, 384, 8
    X = jax.random.normal(kx, (N, D), dtype=jnp.float32)
    Z = jax.random.normal(kz, (M, D), dtype=jnp.float32) + 0.5

    K_ref = exponentiation_kernel_reference(X, Z, p_scale_, amplitude_scale_)

    # Default path: large tiles clamp to full extents, then the dual-TC split
    # turns the (1,1) grid into (2,1).
    K = jax.block_until_ready(
        exponentiation_kernel_pallas(X, Z, p_scale_, amplitude_scale_))
    assert K.shape == (N, M) and K.dtype == jnp.float32
    assert jnp.allclose(K, K_ref, atol=1e-5, rtol=1e-4), "mismatch vs reference"

    # Multi-tile grid path (2 x 3 grid of 128x128 tiles).
    K2 = jax.block_until_ready(
        exponentiation_kernel_pallas(X, Z, p_scale_, amplitude_scale_,
                                     tm=128, tn=128))
    assert jnp.allclose(K2, K_ref, atol=1e-5, rtol=1e-4), "tiled mismatch"

    # bf16 writeback path (halves HBM output traffic); bf16-level tolerance.
    K3 = jax.block_until_ready(
        exponentiation_kernel_pallas(X, Z, p_scale_, amplitude_scale_,
                                     out_dtype=jnp.bfloat16))
    assert K3.dtype == jnp.bfloat16
    assert jnp.allclose(K3.astype(jnp.float32), K_ref, atol=3e-2, rtol=3e-2), \
        "bf16 writeback mismatch"

    print("KERNEL_OK")
</pallas_src>

<mosaic_0001>
module attributes {stable_mosaic.version = 11 : i64} {
  func.func @_expker_kernel(%arg0: i32, %arg1: i32, %arg2: memref<128x1xf32, #tpu.memory_space<vmem>>, %arg3: memref<1x384xf32, #tpu.memory_space<vmem>>, %arg4: memref<128x8xf32, #tpu.memory_space<vmem>>, %arg5: memref<384x8xf32, #tpu.memory_space<vmem>>, %arg6: memref<128x384xf32, #tpu.memory_space<vmem>>) attributes {dimension_semantics = [#tpu.dimension_semantics<parallel>, #tpu.dimension_semantics<parallel>], iteration_bounds = array<i64: 2, 1>, scalar_prefetch = 0 : i64, scratch_operands = 0 : i64, tpu.core_type = #tpu.core_type<tc>, window_params = [{transform_indices = @transform_0, window_bounds = array<i64: 128, 1>}, {transform_indices = @transform_1, window_bounds = array<i64: 1, 384>}, {transform_indices = @transform_2, window_bounds = array<i64: 128, 8>}, {transform_indices = @transform_3, window_bounds = array<i64: 384, 8>}, {transform_indices = @transform_4, window_bounds = array<i64: 128, 384>}]} {
    %c0 = arith.constant 0 : index
    %c0_0 = arith.constant 0 : index
    %0 = vector.load %arg4[%c0, %c0_0] : memref<128x8xf32, #tpu.memory_space<vmem>>, vector<128x8xf32>
    %c0_1 = arith.constant 0 : index
    %c0_2 = arith.constant 0 : index
    %1 = vector.load %arg5[%c0_1, %c0_2] : memref<384x8xf32, #tpu.memory_space<vmem>>, vector<384x8xf32>
    %cst = arith.constant dense<0.000000e+00> : vector<128x384xf32>
    %2 = tpu.matmul %0, %1, %cst {dimension_numbers = #tpu.dot_dimension_numbers<[1], [1], [0], [0], [0, 0, 1, 0], [], []>} : vector<128x8xf32>, vector<384x8xf32>, vector<128x384xf32> -> vector<128x384xf32>
    %c0_3 = arith.constant 0 : index
    %c0_4 = arith.constant 0 : index
    %3 = vector.load %arg2[%c0_3, %c0_4] : memref<128x1xf32, #tpu.memory_space<vmem>>, vector<128x1xf32>
    %4 = vector.broadcast %3 : vector<128x1xf32> to vector<128x384xf32>
    %5 = arith.subf %2, %4 : vector<128x384xf32>
    %c0_5 = arith.constant 0 : index
    %c0_6 = arith.constant 0 : index
    %6 = vector.load %arg3[%c0_5, %c0_6] : memref<1x384xf32, #tpu.memory_space<vmem>>, vector<1x384xf32>
    %7 = vector.broadcast %6 : vector<1x384xf32> to vector<128x384xf32>
    %8 = arith.subf %5, %7 : vector<128x384xf32>
    %9 = math.exp %8 : vector<128x384xf32>
    %c0_7 = arith.constant 0 : index
    %c0_8 = arith.constant 0 : index
    %10 = vector.load %arg6[%c0_7, %c0_8] : memref<128x384xf32, #tpu.memory_space<vmem>>, vector<128x384xf32>
    tpu.vector_store %arg6[%c0_7, %c0_8], %9 {strides = array<i32>} : memref<128x384xf32, #tpu.memory_space<vmem>>, vector<128x384xf32>,
    return
  }
  func.func @transform_0(%arg0: i32, %arg1: i32) -> (i32, i32) {
    %c0_i32 = arith.constant 0 : i32
    %c0_i32_0 = arith.constant 0 : i32
    return %arg0, %c0_i32 : i32, i32
  }
  func.func @transform_1(%arg0: i32, %arg1: i32) -> (i32, i32) {
    %c0_i32 = arith.constant 0 : i32
    %c0_i32_0 = arith.constant 0 : i32
    return %c0_i32, %arg1 : i32, i32
  }
  func.func @transform_2(%arg0: i32, %arg1: i32) -> (i32, i32) {
    %c0_i32 = arith.constant 0 : i32
    %c0_i32_0 = arith.constant 0 : i32
    return %arg0, %c0_i32 : i32, i32
  }
  func.func @transform_3(%arg0: i32, %arg1: i32) -> (i32, i32) {
    %c0_i32 = arith.constant 0 : i32
    %c0_i32_0 = arith.constant 0 : i32
    return %arg1, %c0_i32 : i32, i32
  }
  func.func @transform_4(%arg0: i32, %arg1: i32) -> (i32, i32) {
    %c0_i32 = arith.constant 0 : i32
    return %arg0, %arg1 : i32, i32
  }
}

</mosaic_0001>

<bundles_post_ra>
// kernel: tpu_custom_call.1
= control target key start
LH: loop header
LB: loop body
LE: loop exit
PB: predicated region body
PF: predicated region fallthrough
CT: control target
= control target key end

     0   :  { %9 = vsyncpa [#allocation3], 0  ;;  %s2436_s0 = inlined_call_operand.vmem [shape: f32[256,1], index: 0, kind: input, shape index: {}]   ;;  %s2437_s1 = inlined_call_operand.vmem [shape: f32[1,384], index: 1, kind: input, shape index: {}]   ;;  %s2438_s2 = inlined_call_operand.vmem [shape: f32[256,8], index: 2, kind: input, shape index: {}]   ;;  %s2439_s3 = inlined_call_operand.vmem [shape: f32[384,8], index: 3, kind: input, shape index: {}]   ;;  %s2440_s4 = inlined_call_operand.hbm [shape: f32[256,384], index: 4, kind: output, shape index: {}]  }
   0x1   :  { %11 = vsyncpa [#allocation3 + $0x1], 0  ;;  %s1835_s15 = smov 0   ;;  %s1837_s16 = smov 0  }
   0x2   :  { %s1839_s17 = smov 0   ;;  %s1841_s18 = smov 0  }
   0x3   :  { %s1843_s19 = smov 0   ;;  %s1845_s20 = smov 0  }
   0x4 LB: > { %s1322_s21 = sadd.s32 4294967295, %s1804_s20   ;;  %s1323_s22 = sadd.s32 4294967294, %s1804_s20   ;;  %s1804_s20 = sphi %s1845_s20, %s17_s20   ;;  %s1800_s19 = sphi %s1843_s19, %s2447_s19   ;;  %s1796_s18 = sphi %s1841_s18, %s2446_s18   ;;  %s1792_s17 = sphi %s1839_s17, %s2445_s17   ;;  %s1788_s16 = sphi %s1837_s16, %s2444_s16   ;;  %s1784_s15 = sphi %s1835_s15, %s2443_s15  }
   0x5   : > { %s29_s23 = sadd.s32 1, %s1800_s19  ;;  %s142_s24 = sadd.s32 1, %s1792_s17 }
   0x6   : > { %p31_p0 = scmp.ge.s32.totalorder %s29_s23, 2  ;;  %p152_p1 = scmp.ne.s32.totalorder %s1792_s17, %s1788_s16 }
   0x7   : > { %p153_p2 = scmp.eq.s32.totalorder %s1322_s21, 1  ;;  %p158_p3 = scmp.ne.s32.totalorder %s1788_s16, %s1784_s15 }
   0x8   : > { %s2449_s23 = smov (%p31_p0, %s29_s23), 0  ;;  %p159_p5 = scmp.eq.s32.totalorder %s1323_s22, 1 }
   0x9   : > { %p1875_p4 = por %p153_p2, %p152_p1  ;;  %s137_s26 = ssub.s32 %s1800_s19, %s2449_s23 }
   0xa   : > { %p1328_p6 = scmp.ge.s32.totalorder %s1804_s20, 1  ;;  %p140_p7 = scmp.eq.s32.totalorder %s137_s26, 0 }
   0xb   : > { %p1882_p8 = por %p159_p5, %p158_p3  ;;  %p212_p9 = scmp.lt.s32.totalorder %s1804_s20, 3 }
   0xc   : > { %s1888_s28 = scalar_select %p140_p7, %s1792_s17, %s142_s24  }
   0xd   : > { %p213_p10 = pnand %p1328_p6, %p212_p9 }
   0xe   : > { %s1329_s9 = sshll.u32 (!%p213_p10), %s1796_s18, 4  ;;  %s249_s30 = sand.u32 (!%p213_p10), 1, %s1788_s16  }
   0xf   : > { %216 = sbr.rel (%p213_p10) target bundleno = 376 (0x178), region = 36  ;;  %p253_p11 = scmp.lt.s32.totalorder (!%p213_p10), %s1329_s9, 31 }
  0x10   : > { %s2243_s5 = smul.u32 (!%p213_p10), 384, %s249_s30  ;;  %s1807_s21 = smov (!%p213_p10), [#allocation2]  }
  0x11   : > { %s1571_s7 = smul.u32 (!%p213_p10), 6144, %s1796_s18  ;;  %s2391_s18 = scalar_lea.sflag (!%p213_p10), [#allocation3], %s249_s30 }
  0x12   : > { %s2264_s6 = scalar_lea.vmem (!%p213_p10), [#allocation2], %s2243_s5  ;;  %s1732_s22 = sshll.u32 (!%p213_p10), %s1807_s21, 4  ;;  %s1733_s22 = int_to_ptr.vmem [resolvable:$false] %s1732_s22 }
  0x13   : > { %s1210_s8 = sshll.u32 (!%p213_p10), %s2264_s6, 4  ;;  %s2383_s12 = scalar_lea.hbm (!%p213_p10), %s2440_s4, %s1571_s7  ;;  %s2385_s8 = int_to_ptr.vmem [resolvable:$true] %s1210_s8 }
  0x14   : > { %v324_v0 = vld [vmem:[%s2439_s3 + $0xf8] sm:$0xff]  ;;  %vm341_vm0 = vcmask 64512   ;;  %v323_v2 = vld [vmem:[%s2439_s3 + $0xf0] sm:$0xff]  ;;  %v1806_v4 = vmov 0   ;;  %v322_v7 = vld [vmem:[%s2439_s3 + $0xe8] sm:$0xff]  ;;  %s2451_s9 = smov (!%p253_p11, %s1329_s9), 31  ;;  %p1735_p1 = scmp.lt.s32.totalorder %s2385_s8, %s1733_s22 }
  0x15   : > { %v308_v1 = vld [vmem:[%s2439_s3 + $0x78] sm:$0xff]  ;;  %1418 = vmatprep.subr.msk.mxu0 %vm341_vm0, %v324_v0  ;;  %1630 = vset.pattern.permute.xlu0 %v1806_v4  ;;  %v339_v5 = vld [vmem:[%s2439_s3 + $0x170] sm:$0xff]  ;;  %v338_v8 = vld [vmem:[%s2439_s3 + $0x168] sm:$0xff]  ;;  %s1330_s11 = sshll.u32 %s2451_s9, 3  ;;  %s1728_s13 = scalar_lea.vmem %s2385_s8, 6144 }
  0x16   : > { %v340_v3 = vld [vmem:[%s2439_s3 + $0x178] sm:$0xff]  ;;  %1419 = vmatpush3.xpose.msk.msra.mxu0 %vm341_vm0, %v308_v1  ;;  %v307_v6 = vld [vmem:[%s2439_s3 + $0x70] sm:$0xff]  ;;  %1631 = vset.pattern.permute.xlu1 %v1806_v4  ;;  %v306_v9 = vld [vmem:[%s2439_s3 + $0x68] sm:$0xff]  ;;  %s1950_s9 = scalar_lea.vmem %s2438_s2, %s1330_s11  ;;  %s1979_s14 = scalar_lea.vmem %s2436_s0, %s1330_s11 }
  0x17   : > { %1514 = vmatprep.subr.msk.mxu1 %vm341_vm0, %v340_v3  ;;  %1420 = vmatprep.subr.msk.mxu0 %vm341_vm0, %v323_v2  ;;  %v321_v10 = vld [vmem:[%s2439_s3 + $0xe0] sm:$0xff]  ;;  %v320_v13 = vld [vmem:[%s2439_s3 + $0xd8] sm:$0xff]  ;;  %v319_v17 = vld [vmem:[%s2439_s3 + $0xd0] sm:$0xff]  ;;  %p1729_p12 = scmp.ne.s32.totalorder %s2385_s8, %s1728_s13  ;;  %s1734_s24 = scalar_lea.vmem %s1733_s22, 12288 }
  0x18   : > { %1515 = vmatpush3.xpose.msk.msra.mxu1 %vm341_vm0, %v340_v3  ;;  %v337_v11 = vld [vmem:[%s2439_s3 + $0x160] sm:$0xff]  ;;  %v336_v14 = vld [vmem:[%s2439_s3 + $0x158] sm:$0xff]  ;;  %v335_v18 = vld [vmem:[%s2439_s3 + $0x150] sm:$0xff]  ;;  %p1736_p2 = scmp.lt.s32.totalorder %s1734_s24, %s1728_s13 }
  0x19   : > { %1516 = vmatprep.subr.msk.mxu1 %vm341_vm0, %v339_v5  ;;  %v305_v12 = vld [vmem:[%s2439_s3 + $0x60] sm:$0xff]  ;;  %v304_v15 = vld [vmem:[%s2439_s3 + $0x58] sm:$0xff]  ;;  %v303_v19 = vld [vmem:[%s2439_s3 + $0x50] sm:$0xff]  ;;  %p1730_p13 = pnand %p1729_p12, %p1875_p4 }
  0x1a   : > { %1421 = vmatpush3.xpose.msk.msra.mxu0 %vm341_vm0, %v307_v6  ;;  %v1962_v16 = vld [vmem:[%s1950_s9] sm:$0xff]  ;;  %v318_v20 = vld [vmem:[%s2439_s3 + $0xc8] sm:$0xff]  ;;  %v842_v23 = vld [vmem:[%s1979_s14 + $0x10] sm:$0xff]  ;;  %p1737_p3 = por %p1736_p2, %p1735_p1 }
  0x1b   : > { %1422 = vmatprep.subr.msk.mxu0 %vm341_vm0, %v322_v7  ;;  %1450 = vmatprep.mubr.msk.f32.mxu0 %vm341_vm0, %v1962_v16  ;;  %v334_v21 = vld [vmem:[%s2439_s3 + $0x148] sm:$0xff]  ;;  %v840_v22 = vld [vmem:[%s1979_s14] sm:$0xff]  ;;  %v843_v28 = vld [vmem:[%s1979_s14 + $0x18] sm:$0xff]  ;;  %p1731_p0 = pneg %p1730_p13 }
  0x1c   : > { %1517 = vmatpush3.xpose.msk.msra.mxu1 %vm341_vm0, %v339_v5  ;;  %1546 = vmatprep.mubr.msk.f32.mxu1 %vm341_vm0, %v1962_v16  ;;  %v302_v24 = vld [vmem:[%s2439_s3 + $0x48] sm:$0xff]  ;;  %v317_v26 = vld [vmem:[%s2439_s3 + $0xc0] sm:$0xff]  ;;  %v316_v31 = vld [vmem:[%s2439_s3 + $0xb8] sm:$0xff] }
  0x1d   : > { %1518 = vmatprep.subr.msk.mxu1 %vm341_vm0, %v338_v8  ;;  %858 = vperm.xlu0 %1630, %v840_v22   ;;  %v841_v25 = vld [vmem:[%s1979_s14 + $0x8] sm:$0xff]  ;;  %v333_v27 = vld [vmem:[%s2439_s3 + $0x140] sm:$0xff]  ;;  %v332_v32 = vld [vmem:[%s2439_s3 + $0x138] sm:$0xff]  ;;  %p1738_p5 = pnand %p1737_p3, %p1731_p0 }
  0x1e   : > { %1423 = vmatpush3.xpose.msk.msra.mxu0 %vm341_vm0, %v306_v9  ;;  %868 = vperm.xlu1 %1631, %v842_v23   ;;  %v301_v29 = vld [vmem:[%s2439_s3 + $0x40] sm:$0xff]  ;;  %v845_v33 = vld [vmem:[%s1979_s14 + $0x28] sm:$0xff]  ;;  %v300_v34 = vld [vmem:[%s2439_s3 + $0x38] sm:$0xff] }
  0x1f   : > { %1424 = vmatprep.subr.msk.mxu0 %vm341_vm0, %v321_v10  ;;  %v844_v30 = vld [vmem:[%s1979_s14 + $0x20] sm:$0xff]  ;;  %v846_v35 = vld [vmem:[%s1979_s14 + $0x30] sm:$0xff]  ;;  %v847_v38 = vld [vmem:[%s1979_s14 + $0x38] sm:$0xff] }
  0x20   : > { %1519 = vmatpush3.xpose.msk.msra.mxu1 %vm341_vm0, %v338_v8  ;;  %v315_v36 = vld [vmem:[%s2439_s3 + $0xb0] sm:$0xff]  ;;  %v848_v40 = vld [vmem:[%s1979_s14 + $0x40] sm:$0xff]  ;;  %v314_v41 = vld [vmem:[%s2439_s3 + $0xa8] sm:$0xff] }
  0x21   : > { %1520 = vmatprep.subr.msk.mxu1 %vm341_vm0, %v337_v11  ;;  %863 = vperm.xlu0 %1630, %v841_v25   ;;  %v331_v37 = vld [vmem:[%s2439_s3 + $0x130] sm:$0xff]  ;;  %v330_v42 = vld [vmem:[%s2439_s3 + $0x128] sm:$0xff]  ;;  %v313_v46 = vld [vmem:[%s2439_s3 + $0xa0] sm:$0xff] }
  0x22   : > { %1425 = vmatpush3.xpose.msk.msra.mxu0 %vm341_vm0, %v305_v12  ;;  %873 = vperm.xlu1 %1631, %v843_v28   ;;  %v299_v39 = vld [vmem:[%s2439_s3 + $0x30] sm:$0xff]  ;;  %v849_v43 = vld [vmem:[%s1979_s14 + $0x48] sm:$0xff]  ;;  %v329_v47 = vld [vmem:[%s2439_s3 + $0x120] sm:$0xff] }
  0x23   : > { %1426 = vmatprep.subr.msk.mxu0 %vm341_vm0, %v320_v13  ;;  %v298_v44 = vld [vmem:[%s2439_s3 + $0x28] sm:$0xff]  ;;  %v850_v45 = vld [vmem:[%s1979_s14 + $0x50] sm:$0xff]  ;;  %v851_v48 = vld [vmem:[%s1979_s14 + $0x58] sm:$0xff] }
  0x24   : > { %1521 = vmatpush3.xpose.msk.msra.mxu1 %vm341_vm0, %v337_v11  ;;  %v297_v49 = vld [vmem:[%s2439_s3 + $0x20] sm:$0xff]  ;;  %v312_v51 = vld [vmem:[%s2439_s3 + $0x98] sm:$0xff]  ;;  %v853_v53 = vld [vmem:[%s1979_s14 + $0x68] sm:$0xff] }
  0x25   : > { %1522 = vmatprep.subr.msk.mxu1 %vm341_vm0, %v336_v14  ;;  %878 = vperm.xlu0 %1630, %v844_v30   ;;  %v852_v50 = vld [vmem:[%s1979_s14 + $0x60] sm:$0xff]  ;;  %v328_v52 = vld [vmem:[%s2439_s3 + $0x118] sm:$0xff]  ;;  %v854_v55 = vld [vmem:[%s1979_s14 + $0x70] sm:$0xff] }
  0x26   : > { %1427 = vmatpush3.xpose.msk.msra.mxu0 %vm341_vm0, %v304_v15  ;;  %883 = vperm.xlu1 %1631, %v845_v33   ;;  %v296_v54 = vld [vmem:[%s2439_s3 + $0x18] sm:$0xff]  ;;  %v311_v56 = vld [vmem:[%s2439_s3 + $0x90] sm:$0xff]  ;;  %v310_v60 = vld [vmem:[%s2439_s3 + $0x88] sm:$0xff] }
  0x27   : > { %1428 = vmatprep.subr.msk.mxu0 %vm341_vm0, %v319_v17  ;;  %v327_v57 = vld [vmem:[%s2439_s3 + $0x110] sm:$0xff]  ;;  %v855_v58 = vld [vmem:[%s1979_s14 + $0x78] sm:$0xff]  ;;  %v326_v61 = vld [vmem:[%s2439_s3 + $0x108] sm:$0xff] }
  0x28   : > { %1523 = vmatpush3.xpose.msk.msra.mxu1 %vm341_vm0, %v336_v14  ;;  %v295_v59 = vld [vmem:[%s2439_s3 + $0x10] sm:$0xff]  ;;  %v294_v62 = vld [vmem:[%s2439_s3 + $0x8] sm:$0xff]  ;;  %v309_v63 = vld [vmem:[%s2439_s3 + $0x80] sm:$0xff] }
  0x29   : > { %1524 = vmatprep.subr.msk.mxu1 %vm341_vm0, %v335_v18  ;;  %888 = vperm.xlu0 %1630, %v846_v35   ;;  %v325_v0 = vld [vmem:[%s2439_s3 + $0x100] sm:$0xff]  ;;  %v278_v2 = vld [vmem:[%s1950_s9 + $0x8] sm:$0xff]  ;;  %v279_v3 = vld [vmem:[%s1950_s9 + $0x10] sm:$0xff] }
  0x2a   : > { %1429 = vmatpush3.xpose.msk.msra.mxu0 %vm341_vm0, %v303_v19  ;;  %893 = vperm.xlu1 %1631, %v847_v38   ;;  %v293_v1 = vld [vmem:[%s2439_s3] sm:$0xff]  ;;  %v280_v4 = vld [vmem:[%s1950_s9 + $0x18] sm:$0xff]  ;;  %v282_v6 = vld [vmem:[%s1950_s9 + $0x28] sm:$0xff] }
  0x2b   : > { %1430 = vmatprep.subr.msk.mxu0 %vm341_vm0, %v318_v20  ;;  %v281_v5 = vld [vmem:[%s1950_s9 + $0x20] sm:$0xff]  ;;  %v283_v7 = vld [vmem:[%s1950_s9 + $0x30] sm:$0xff]  ;;  %v284_v8 = vld [vmem:[%s1950_s9 + $0x38] sm:$0xff] }
  0x2c   : > { %1525 = vmatpush3.xpose.msk.msra.mxu1 %vm341_vm0, %v335_v18  ;;  %v285_v9 = vld [vmem:[%s1950_s9 + $0x40] sm:$0xff]  ;;  %v286_v10 = vld [vmem:[%s1950_s9 + $0x48] sm:$0xff]  ;;  %v287_v11 = vld [vmem:[%s1950_s9 + $0x50] sm:$0xff]  ;;  %v986_v18 = vlaneseq }
  0x2d   : > { %1526 = vmatprep.subr.msk.mxu1 %vm341_vm0, %v334_v21  ;;  %898 = vperm.xlu0 %1630, %v848_v40   ;;  %v288_v12 = vld [vmem:[%s1950_s9 + $0x58] sm:$0xff]  ;;  %v289_v13 = vld [vmem:[%s1950_s9 + $0x60] sm:$0xff]  ;;  %v290_v14 = vld [vmem:[%s1950_s9 + $0x68] sm:$0xff] }
  0x2e   : > { %1431 = vmatpush3.xpose.msk.msra.mxu0 %vm341_vm0, %v302_v24  ;;  %903 = vperm.xlu1 %1631, %v849_v43   ;;  %v291_v15 = vld [vmem:[%s1950_s9 + $0x70] sm:$0xff]  ;;  %v987_v20 = vshrl.u32 %v986_v18, 7  ;;  %v984_v24 = vld [vmem:[%s2437_s1] sm:$0x7] }
  0x2f   : > { %1432 = vmatprep.subr.msk.mxu0 %vm341_vm0, %v317_v26 }
  0x30   : > { %1527 = vmatpush3.xpose.msk.msra.mxu1 %vm341_vm0, %v334_v21  ;;  %v988_v22 = vsub.s32 0, %v987_v20  ;;  %v996_v25 = vsub.s32 2, %v987_v20  ;;  %v992_v26 = vsub.s32 1, %v987_v20 }
  0x31   : > { %1528 = vmatprep.subr.msk.mxu1 %vm341_vm0, %v333_v27  ;;  %908 = vperm.xlu0 %1630, %v850_v45  }
  0x32   : > { %1433 = vmatpush3.xpose.msk.msra.mxu0 %vm341_vm0, %v301_v29  ;;  %913 = vperm.xlu1 %1631, %v851_v48   ;;  %v2206_v28 = vrot.slane %v984_v24, %v988_v22  ;;  %v2212_v33 = vrot.slane %v984_v24, %v992_v26 }
  0x33   : > { %1434 = vmatprep.subr.msk.mxu0 %vm341_vm0, %v316_v31  ;;  %v2210_v31 = vrot.slane %v984_v24, %v996_v25 }
  0x34   : > { %1529 = vmatpush3.xpose.msk.msra.mxu1 %vm341_vm0, %v333_v27 }
  0x35   : > { %1530 = vmatprep.subr.msk.mxu1 %vm341_vm0, %v332_v32  ;;  %918 = vperm.xlu0 %1630, %v852_v50  }
  0x36   : > { %1435 = vmatpush3.xpose.msk.msra.mxu0 %vm341_vm0, %v300_v34  ;;  %923 = vperm.xlu1 %1631, %v853_v53  }
  0x37   : > { %1436 = vmatprep.subr.msk.mxu0 %vm341_vm0, %v315_v36 }
  0x38   : > { %1531 = vmatpush3.xpose.msk.msra.mxu1 %vm341_vm0, %v332_v32 }
  0x39   : > { %1532 = vmatprep.subr.msk.mxu1 %vm341_vm0, %v331_v37  ;;  %928 = vperm.xlu0 %1630, %v854_v55  }
  0x3a   : > { %1437 = vmatpush3.xpose.msk.msra.mxu0 %vm341_vm0, %v299_v39  ;;  %933 = vperm.xlu1 %1631, %v855_v58  }
  0x3b   : > { %1438 = vmatprep.subr.msk.mxu0 %vm341_vm0, %v314_v41 }
  0x3c   : > { %1533 = vmatpush3.xpose.msk.msra.mxu1 %vm341_vm0, %v331_v37 }
  0x3d   : > { %1534 = vmatprep.subr.msk.mxu1 %vm341_vm0, %v330_v42 }
  0x3e   : > { %1439 = vmatpush3.xpose.msk.msra.mxu0 %vm341_vm0, %v298_v44 }
  0x3f   : > { %1440 = vmatprep.subr.msk.mxu0 %vm341_vm0, %v313_v46 }
  0x40   : > { %1535 = vmatpush3.xpose.msk.msra.mxu1 %vm341_vm0, %v330_v42 }
  0x41   : > { %1536 = vmatprep.subr.msk.mxu1 %vm341_vm0, %v329_v47 }
  0x42   : > { %1441 = vmatpush3.xpose.msk.msra.mxu0 %vm341_vm0, %v297_v49 }
  0x43   : > { %1442 = vmatprep.subr.msk.mxu0 %vm341_vm0, %v312_v51 }
  0x44   : > { %1537 = vmatpush3.xpose.msk.msra.mxu1 %vm341_vm0, %v329_v47 }
  0x45   : > { %1538 = vmatprep.subr.msk.mxu1 %vm341_vm0, %v328_v52 }
  0x46   : > { %1443 = vmatpush3.xpose.msk.msra.mxu0 %vm341_vm0, %v296_v54 }
  0x47   : > { %1444 = vmatprep.subr.msk.mxu0 %vm341_vm0, %v311_v56 }
  0x48   : > { %1539 = vmatpush3.xpose.msk.msra.mxu1 %vm341_vm0, %v328_v52 }
  0x49   : > { %1540 = vmatprep.subr.msk.mxu1 %vm341_vm0, %v327_v57 }
  0x4a   : > { %1445 = vmatpush3.xpose.msk.msra.mxu0 %vm341_vm0, %v295_v59 }
  0x4b   : > { %1446 = vmatprep.subr.msk.mxu0 %vm341_vm0, %v310_v60 }
  0x4c   : > { %1541 = vmatpush3.xpose.msk.msra.mxu1 %vm341_vm0, %v327_v57 }
  0x4d   : > { %1542 = vmatprep.subr.msk.mxu1 %vm341_vm0, %v326_v61 }
  0x4e   : > { %1447 = vmatpush3.xpose.msk.msra.mxu0 %vm341_vm0, %v294_v62 }
  0x4f   : > { %1448 = vmatprep.subr.msk.mxu0 %vm341_vm0, %v309_v63 }
  0x50   : > { %1543 = vmatpush3.xpose.msk.msra.mxu1 %vm341_vm0, %v326_v61 }
  0x51   : > { %1544 = vmatprep.subr.msk.mxu1 %vm341_vm0, %v325_v0 }
  0x52   : > { %1449 = vmatpush3.xpose.msk.msra.mxu0 %vm341_vm0, %v293_v1 }
  0x54   : > { %1545 = vmatpush3.xpose.msk.msra.mxu1 %vm341_vm0, %v325_v0 }
  0x55   : > { %1451 = vmatmul.mubr.msk.f32.vlgmr.msra.gmra.mxu0 %vm341_vm0, %v1962_v16  ;;  %v292_v16 = vld [vmem:[%s1950_s9 + $0x78] sm:$0xff] }
  0x56   : > { %1452 = vmatprep.mubr.msk.f32.mxu0 %vm341_vm0, %v278_v2 }
  0x57   : > { %1547 = vmatmul.mubr.msk.f32.vlgmr.msra.gmra.mxu1 %vm341_vm0, %v278_v2 }
  0x58   : > { %1549 = vmatprep.mubr.msk.f32.mxu1 %vm341_vm0, %v279_v3 }
  0x59   : > { %1453 = vmatmul.mubr.msk.f32.gmra.mxu0 %vm341_vm0, %v278_v2 }
  0x5a   : > { %1454 = vmatprep.mubr.msk.f32.mxu0 %vm341_vm0, %v279_v3 }
  0x5b   : > { %1550 = vmatmul.mubr.msk.f32.gmra.mxu1 %vm341_vm0, %v280_v4 }
  0x5c   : > { %1552 = vmatprep.mubr.msk.f32.mxu1 %vm341_vm0, %v281_v5 }
  0x5d   : > { %1455 = vmatmul.mubr.msk.f32.gmra.mxu0 %vm341_vm0, %v279_v3 }
  0x5e   : > { %1456 = vmatprep.mubr.msk.f32.mxu0 %vm341_vm0, %v280_v4 }
  0x5f   : > { %1553 = vmatmul.mubr.msk.f32.gmra.mxu1 %vm341_vm0, %v282_v6 }
  0x60   : > { %1555 = vmatprep.mubr.msk.f32.mxu1 %vm341_vm0, %v283_v7 }
  0x61   : > { %1457 = vmatmul.mubr.msk.f32.gmra.mxu0 %vm341_vm0, %v280_v4 }
  0x62   : > { %1458 = vmatprep.mubr.msk.f32.mxu0 %vm341_vm0, %v281_v5 }
  0x63   : > { %1556 = vmatmul.mubr.msk.f32.gmra.mxu1 %vm341_vm0, %v284_v8 }
  0x64   : > { %1558 = vmatprep.mubr.msk.f32.mxu1 %vm341_vm0, %v285_v9 }
  0x65   : > { %1459 = vmatmul.mubr.msk.f32.gmra.mxu0 %vm341_vm0, %v281_v5 }
  0x66   : > { %1460 = vmatprep.mubr.msk.f32.mxu0 %vm341_vm0, %v282_v6 }
  0x67   : > { %1559 = vmatmul.mubr.msk.f32.gmra.mxu1 %vm341_vm0, %v286_v10 }
  0x68   : > { %1561 = vmatprep.mubr.msk.f32.mxu1 %vm341_vm0, %v287_v11 }
  0x69   : > { %1461 = vmatmul.mubr.msk.f32.gmra.mxu0 %vm341_vm0, %v282_v6 }
  0x6a   : > { %1462 = vmatprep.mubr.msk.f32.mxu0 %vm341_vm0, %v283_v7 }
  0x6b   : > { %1562 = vmatmul.mubr.msk.f32.gmra.mxu1 %vm341_vm0, %v288_v12 }
  0x6c   : > { %1564 = vmatprep.mubr.msk.f32.mxu1 %vm341_vm0, %v289_v13 }
  0x6d   : > { %1463 = vmatmul.mubr.msk.f32.gmra.mxu0 %vm341_vm0, %v283_v7 }
  0x6e   : > { %1464 = vmatprep.mubr.msk.f32.mxu0 %vm341_vm0, %v284_v8 }
  0x6f   : > { %1565 = vmatmul.mubr.msk.f32.gmra.mxu1 %vm341_vm0, %v290_v14 }
  0x70   : > { %1567 = vmatprep.mubr.msk.f32.mxu1 %vm341_vm0, %v291_v15 }
  0x71   : > { %1465 = vmatmul.mubr.msk.f32.gmra.mxu0 %vm341_vm0, %v284_v8 }
  0x72   : > { %1466 = vmatprep.mubr.msk.f32.mxu0 %vm341_vm0, %v285_v9 }
  0x73   : > { %1568 = vmatmul.mubr.msk.f32.gmra.mxu1 %vm341_vm0, %v292_v16 }
  0x75   : > { %1467 = vmatmul.mubr.msk.f32.gmra.mxu0 %vm341_vm0, %v285_v9 }
  0x76   : > { %1468 = vmatprep.mubr.msk.f32.mxu0 %vm341_vm0, %v286_v10 }
  0x79   : > { %1469 = vmatmul.mubr.msk.f32.gmra.mxu0 %vm341_vm0, %v286_v10 }
  0x7a   : > { %1470 = vmatprep.mubr.msk.f32.mxu0 %vm341_vm0, %v287_v11 }
  0x7d   : > { %1471 = vmatmul.mubr.msk.f32.gmra.mxu0 %vm341_vm0, %v287_v11 }
  0x7e   : > { %1472 = vmatprep.mubr.msk.f32.mxu0 %vm341_vm0, %v288_v12 }
  0x81   : > { %1473 = vmatmul.mubr.msk.f32.gmra.mxu0 %vm341_vm0, %v288_v12 }
  0x82   : > { %1474 = vmatprep.mubr.msk.f32.mxu0 %vm341_vm0, %v289_v13 }
  0x85   : > { %1475 = vmatmul.mubr.msk.f32.gmra.mxu0 %vm341_vm0, %v289_v13 }
  0x86   : > { %1476 = vmatprep.mubr.msk.f32.mxu0 %vm341_vm0, %v290_v14 }
  0x89   : > { %1477 = vmatmul.mubr.msk.f32.gmra.mxu0 %vm341_vm0, %v290_v14 }
  0x8a   : > { %1478 = vmatprep.mubr.msk.f32.mxu0 %vm341_vm0, %v291_v15 }
  0x8d   : > { %1479 = vmatmul.mubr.msk.f32.gmra.mxu0 %vm341_vm0, %v291_v15 }
  0x8e   : > { %1480 = vmatprep.mubr.msk.f32.mxu0 %vm341_vm0, %v292_v16 }
  0x91   : > { %1481 = vmatmul.mubr.msk.f32.gmra.mxu0 %vm341_vm0, %v292_v16 }
  0x98   : > { %v859_v19 = vpop.permute.xlu0 %858 }
  0x99   : > { %v2197_v17 = vpop.permute.xlu1 %868 }
  0x9c   : > { %v864_v23 = vpop.permute.xlu0 %863 }
  0x9d   : > { %v2199_v21 = vpop.permute.xlu1 %873 }
  0xa0   : > { %v2208_v29 = vpop.permute.xlu0 %878 }
  0xa1   : > { %v2204_v27 = vpop.permute.xlu1 %883 }
  0xa4   : > { %v2219_v48 = vpop.permute.xlu0 %888 }
  0xa5   : > { %v2215_v40 = vpop.permute.xlu1 %893 }
  0xa8   : > { %v2235_v10 = vpop.permute.xlu0 %898 }
  0xa9   : > { %v2228_v1 = vpop.permute.xlu1 %903 }
 0x115   : > { %v600_v30 = vpop.f32.mrf.mxu0 }
 0x116   : > { %v936_v32 = vsub.f32 %v600_v30, %v859_v19 }
 0x117   : > { %v1548_v34 = vpop.f32.mrf.mxu1  ;;  %v602_v35 = vpop.f32.mrf.mxu0 }
 0x118   : > { %v941_v36 = vsub.f32 %v1548_v34, %v864_v23  ;;  %v1001_v37 = vsub.f32 %v936_v32, %v2206_v28  ;;  %v937_v38 = vsub.f32 %v602_v35, %v859_v19  ;;  %v2249_v32 = vpop.permute.xlu1 %913 }
 0x119   : > { %v761_v39 = vpop.f32.mrf.mxu1  ;;  %v606_v41 = vpop.f32.mrf.mxu0 }
 0x11a   : > { %v1006_v42 = vsub.f32 %v941_v36, %v2210_v31  ;;  %v938_v43 = vsub.f32 %v761_v39, %v859_v19  ;;  %v1049_v44 = vmul.f32 1.442695, %v1001_v37  ;;  %v1002_v45 = vsub.f32 %v937_v38, %v2212_v33 }
 0x11b   : > { %v939_v46 = vsub.f32 %v606_v41, %v864_v23  ;;  %v1551_v47 = vpop.f32.mrf.mxu1  ;;  %v608_v50 = vpop.f32.mrf.mxu0 }
 0x11c   : > { %v1059_v49 = vmul.f32 1.442695, %v1006_v42  ;;  %v1003_v51 = vsub.f32 %v938_v43, %v2210_v31  ;;  %v947_v52 = vsub.f32 %v1551_v47, %v2199_v21  ;;  %1632 = vpow2.f32 %v1049_v44  ;;  %v2255_v43 = vpop.permute.xlu0 %908 }
 0x11d   : > { %v1051_v53 = vmul.f32 1.442695, %v1002_v45  ;;  %v1004_v54 = vsub.f32 %v939_v46, %v2206_v28  ;;  %v940_v55 = vsub.f32 %v608_v50, %v864_v23  ;;  %v771_v56 = vpop.f32.mrf.mxu1  ;;  %v612_v58 = vpop.f32.mrf.mxu0 }
 0x11e   : > { %1634 = vpow2.f32 %v1059_v49  ;;  %v1053_v57 = vmul.f32 1.442695, %v1003_v51  ;;  %v944_v59 = vsub.f32 %v771_v56, %v2197_v17  ;;  %v1012_v60 = vsub.f32 %v947_v52, %v2210_v31 }
 0x11f   : > { %1636 = vpow2.f32 %v1051_v53  ;;  %v1055_v61 = vmul.f32 1.442695, %v1004_v54  ;;  %v1005_v62 = vsub.f32 %v940_v55, %v2212_v33  ;;  %v942_v63 = vsub.f32 %v612_v58, %v2197_v17  ;;  %v1554_v0 = vpop.f32.mrf.mxu1  ;;  %v614_v2 = vpop.f32.mrf.mxu0 }
 0x120   : > { %1638 = vpow2.f32 %v1053_v57  ;;  %v1009_v3 = vsub.f32 %v944_v59, %v2210_v31  ;;  %v1071_v4 = vmul.f32 1.442695, %v1012_v60  ;;  %v953_v5 = vsub.f32 %v1554_v0, %v2204_v27 }
 0x121   : > { %1640 = vpow2.f32 %v1055_v61  ;;  %v1057_v6 = vmul.f32 1.442695, %v1005_v62  ;;  %v1007_v7 = vsub.f32 %v942_v63, %v2206_v28  ;;  %v943_v8 = vsub.f32 %v614_v2, %v2197_v17  ;;  %v781_v9 = vpop.f32.mrf.mxu1  ;;  %v618_v12 = vpop.f32.mrf.mxu0 }
 0x122   : > { %v1065_v11 = vmul.f32 1.442695, %v1009_v3  ;;  %1642 = vpow2.f32 %v1071_v4  ;;  %v1018_v13 = vsub.f32 %v953_v5, %v2210_v31  ;;  %v950_v14 = vsub.f32 %v781_v9, %v2208_v29  ;;  %v2269_v61 = vpop.permute.xlu1 %923  ;;  %v2277_v9 = vpop.permute.xlu0 %918 }
 0x123   : > { %1644 = vpow2.f32 %v1057_v6  ;;  %v1061_v15 = vmul.f32 1.442695, %v1007_v7  ;;  %v1008_v16 = vsub.f32 %v943_v8, %v2212_v33  ;;  %v945_v18 = vsub.f32 %v618_v12, %v2199_v21  ;;  %v1557_v19 = vpop.f32.mrf.mxu1  ;;  %v620_v17 = vpop.f32.mrf.mxu0 }
 0x124   : > { %1646 = vpow2.f32 %v1065_v11  ;;  %v1083_v20 = vmul.f32 1.442695, %v1018_v13  ;;  %v1015_v22 = vsub.f32 %v950_v14, %v2210_v31  ;;  %v959_v23 = vsub.f32 %v1557_v19, %v2215_v40 }
 0x125   : > { %1648 = vpow2.f32 %v1061_v15  ;;  %v1063_v24 = vmul.f32 1.442695, %v1008_v16  ;;  %v1010_v25 = vsub.f32 %v945_v18, %v2206_v28  ;;  %v946_v26 = vsub.f32 %v620_v17, %v2199_v21  ;;  %v791_v30 = vpop.f32.mrf.mxu1  ;;  %v624_v35 = vpop.f32.mrf.mxu0 }
 0x126   : > { %1650 = vpow2.f32 %v1083_v20  ;;  %v1077_v34 = vmul.f32 1.442695, %v1015_v22  ;;  %v1024_v36 = vsub.f32 %v959_v23, %v2210_v31  ;;  %v956_v37 = vsub.f32 %v791_v30, %v2219_v48 }
 0x127   : > { %1652 = vpow2.f32 %v1063_v24  ;;  %v1067_v38 = vmul.f32 1.442695, %v1010_v25  ;;  %v1011_v39 = vsub.f32 %v946_v26, %v2212_v33  ;;  %v948_v41 = vsub.f32 %v624_v35, %v2208_v29  ;;  %v1560_v42 = vpop.f32.mrf.mxu1  ;;  %v626_v21 = vpop.f32.mrf.mxu0 }
 0x128   : > { %1654 = vpow2.f32 %v1077_v34  ;;  %v1095_v44 = vmul.f32 1.442695, %v1024_v36  ;;  %v1021_v45 = vsub.f32 %v956_v37, %v2210_v31  ;;  %v965_v46 = vsub.f32 %v1560_v42, %v2228_v1  ;;  %v2291_v37 = vpop.permute.xlu1 %933 }
 0x129   : > { %1656 = vpow2.f32 %v1067_v38  ;;  %v1069_v47 = vmul.f32 1.442695, %v1011_v39  ;;  %v1013_v49 = vsub.f32 %v948_v41, %v2206_v28  ;;  %v949_v50 = vsub.f32 %v626_v21, %v2208_v29  ;;  %v801_v51 = vpop.f32.mrf.mxu1  ;;  %v1633_v52 = vpop.eup %1632 }
 0x12a   : > { %1658 = vpow2.f32 %v1095_v44  ;;  %v1089_v53 = vmul.f32 1.442695, %v1021_v45  ;;  %v630_v54 = vpop.f32.mrf.mxu0  ;;  %v1030_v55 = vsub.f32 %v965_v46, %v2210_v31  ;;  %v962_v56 = vsub.f32 %v801_v51, %v2235_v10  ;;  %1145 = vst [vmem:[%s2264_s6] sm:$0xff] %v1633_v52 }
 0x12b   : > { %v1635_v57 = vpop.eup %1634  ;;  %1660 = vpow2.f32 %v1069_v47  ;;  %v1073_v58 = vmul.f32 1.442695, %v1013_v49  ;;  %v1014_v29 = vsub.f32 %v949_v50, %v2212_v33  ;;  %v951_v59 = vsub.f32 %v630_v54, %v2204_v27  ;;  %v1563_v60 = vpop.f32.mrf.mxu1 }
 0x12c   : > { %v1637_v62 = vpop.eup %1636  ;;  %1150 = vst [vmem:[%s2264_s6 + $0x28] sm:$0xff] %v1635_v57  ;;  %1662 = vpow2.f32 %v1089_v53  ;;  %v632_v63 = vpop.f32.mrf.mxu0  ;;  %v1107_v0 = vmul.f32 1.442695, %v1030_v55  ;;  %v1027_v2 = vsub.f32 %v962_v56, %v2210_v31  ;;  %v971_v3 = vsub.f32 %v1563_v60, %v2249_v32 }
 0x12d   : > { %v1639_v4 = vpop.eup %1638  ;;  %1146 = vst [vmem:[%s2264_s6 + $0x8] sm:$0xff] %v1637_v62  ;;  %1664 = vpow2.f32 %v1073_v58  ;;  %v1075_v5 = vmul.f32 1.442695, %v1014_v29  ;;  %v1016_v6 = vsub.f32 %v951_v59, %v2206_v28  ;;  %v952_v7 = vsub.f32 %v632_v63, %v2204_v27  ;;  %v811_v8 = vpop.f32.mrf.mxu1 }
 0x12e   : > { %v1641_v11 = vpop.eup %1640  ;;  %1147 = vst [vmem:[%s2264_s6 + $0x10] sm:$0xff] %v1639_v4  ;;  %1666 = vpow2.f32 %v1107_v0  ;;  %v1101_v12 = vmul.f32 1.442695, %v1027_v2  ;;  %v636_v13 = vpop.f32.mrf.mxu0  ;;  %v1036_v14 = vsub.f32 %v971_v3, %v2210_v31  ;;  %v968_v15 = vsub.f32 %v811_v8, %v2255_v43 }
 0x12f   : > { %v1643_v16 = vpop.eup %1642  ;;  %1148 = vst [vmem:[%s2264_s6 + $0x18] sm:$0xff] %v1641_v11  ;;  %1668 = vpow2.f32 %v1075_v5  ;;  %v1079_v18 = vmul.f32 1.442695, %v1016_v6  ;;  %v1017_v27 = vsub.f32 %v952_v7, %v2212_v33  ;;  %v954_v19 = vsub.f32 %v636_v13, %v2219_v48  ;;  %v1566_v17 = vpop.f32.mrf.mxu1 }
 0x130   : > { %v1645_v20 = vpop.eup %1644  ;;  %1156 = vst [vmem:[%s2264_s6 + $0x58] sm:$0xff] %v1643_v16  ;;  %1670 = vpow2.f32 %v1101_v12  ;;  %v638_v22 = vpop.f32.mrf.mxu0  ;;  %v1119_v23 = vmul.f32 1.442695, %v1036_v14  ;;  %v1033_v24 = vsub.f32 %v968_v15, %v2210_v31  ;;  %v977_v25 = vsub.f32 %v1566_v17, %v2269_v61 }
 0x131   : > { %v1647_v26 = vpop.eup %1646  ;;  %1149 = vst [vmem:[%s2264_s6 + $0x20] sm:$0xff] %v1645_v20  ;;  %1672 = vpow2.f32 %v1079_v18  ;;  %v1081_v30 = vmul.f32 1.442695, %v1017_v27  ;;  %v1019_v34 = vsub.f32 %v954_v19, %v2206_v28  ;;  %v955_v35 = vsub.f32 %v638_v22, %v2219_v48  ;;  %v821_v36 = vpop.f32.mrf.mxu1 }
 0x132   : > { %v1649_v38 = vpop.eup %1648  ;;  %1153 = vst [vmem:[%s2264_s6 + $0x40] sm:$0xff] %v1647_v26  ;;  %1674 = vpow2.f32 %v1119_v23  ;;  %v1113_v39 = vmul.f32 1.442695, %v1033_v24  ;;  %v642_v41 = vpop.f32.mrf.mxu0  ;;  %v1042_v42 = vsub.f32 %v977_v25, %v2210_v31  ;;  %v974_v21 = vsub.f32 %v821_v36, %v2277_v9 }
 0x133   : > { %v1651_v44 = vpop.eup %1650  ;;  %1151 = vst [vmem:[%s2264_s6 + $0x30] sm:$0xff] %v1649_v38  ;;  %1676 = vpow2.f32 %v1081_v30  ;;  %v1085_v45 = vmul.f32 1.442695, %v1019_v34  ;;  %v1020_v48 = vsub.f32 %v955_v35, %v2212_v33  ;;  %v957_v46 = vsub.f32 %v642_v41, %v2215_v40  ;;  %v1569_v47 = vpop.f32.mrf.mxu1 }
 0x134   : > { %v2299_v49 = vpop.permute.xlu0 %928  ;;  %v1653_v50 = vpop.eup %1652  ;;  %1162 = vst [vmem:[%s2264_s6 + $0x88] sm:$0xff] %v1651_v44  ;;  %1678 = vpow2.f32 %v1113_v39  ;;  %v1131_v52 = vmul.f32 1.442695, %v1042_v42  ;;  %v1039_v53 = vsub.f32 %v974_v21, %v2210_v31  ;;  %v983_v54 = vsub.f32 %v1569_v47, %v2291_v37 }
 0x135   : > { %v644_v51 = vpop.f32.mrf.mxu0  ;;  %v1655_v55 = vpop.eup %1654  ;;  %1152 = vst [vmem:[%s2264_s6 + $0x38] sm:$0xff] %v1653_v50  ;;  %1680 = vpow2.f32 %v1085_v45  ;;  %v1087_v56 = vmul.f32 1.442695, %v1020_v48  ;;  %v1022_v57 = vsub.f32 %v957_v46, %v2206_v28 }
 0x136   : > { %v958_v58 = vsub.f32 %v644_v51, %v2215_v40  ;;  %v831_v29 = vpop.f32.mrf.mxu1  ;;  %v1657_v59 = vpop.eup %1656  ;;  %1159 = vst [vmem:[%s2264_s6 + $0x70] sm:$0xff] %v1655_v55  ;;  %1682 = vpow2.f32 %v1131_v52  ;;  %v1125_v60 = vmul.f32 1.442695, %v1039_v53  ;;  %v1048_v63 = vsub.f32 %v983_v54, %v2210_v31 }
 0x137   : > { %v648_v62 = vpop.f32.mrf.mxu0  ;;  %v980_v0 = vsub.f32 %v831_v29, %v2299_v49  ;;  %v1659_v2 = vpop.eup %1658  ;;  %1154 = vst [vmem:[%s2264_s6 + $0x48] sm:$0xff] %v1657_v59  ;;  %1684 = vpow2.f32 %v1087_v56  ;;  %v1091_v3 = vmul.f32 1.442695, %v1022_v57 }
 0x138   : > { %v1023_v4 = vsub.f32 %v958_v58, %v2212_v33  ;;  %v960_v40 = vsub.f32 %v648_v62, %v2235_v10  ;;  %v1661_v5 = vpop.eup %1660  ;;  %1168 = vst [vmem:[%s2264_s6 + $0xb8] sm:$0xff] %v1659_v2  ;;  %1686 = vpow2.f32 %v1125_v60  ;;  %v1143_v7 = vmul.f32 1.442695, %v1048_v63 }
 0x139   : > { %v650_v6 = vpop.f32.mrf.mxu0  ;;  %v1045_v8 = vsub.f32 %v980_v0, %v2210_v31  ;;  %v1663_v11 = vpop.eup %1662  ;;  %1155 = vst [vmem:[%s2264_s6 + $0x50] sm:$0xff] %v1661_v5  ;;  %1688 = vpow2.f32 %v1091_v3 }
 0x13a   : > { %v1093_v12 = vmul.f32 1.442695, %v1023_v4  ;;  %v1025_v13 = vsub.f32 %v960_v40, %v2206_v28  ;;  %v961_v14 = vsub.f32 %v650_v6, %v2235_v10  ;;  %v1665_v15 = vpop.eup %1664  ;;  %1165 = vst [vmem:[%s2264_s6 + $0xa0] sm:$0xff] %v1663_v11  ;;  %1690 = vpow2.f32 %v1143_v7 }
 0x13b   : > { %v1137_v16 = vmul.f32 1.442695, %v1045_v8  ;;  %v654_v18 = vpop.f32.mrf.mxu0  ;;  %v1667_v27 = vpop.eup %1666  ;;  %1157 = vst [vmem:[%s2264_s6 + $0x60] sm:$0xff] %v1665_v15 }
 0x13c   : > { %1692 = vpow2.f32 %v1093_v12  ;;  %v1097_v31 = vmul.f32 1.442695, %v1025_v13  ;;  %v1026_v19 = vsub.f32 %v961_v14, %v2212_v33  ;;  %v963_v17 = vsub.f32 %v654_v18, %v2228_v1  ;;  %v1669_v20 = vpop.eup %1668  ;;  %1174 = vst [vmem:[%s2264_s6 + $0xe8] sm:$0xff] %v1667_v27 }
 0x13d   : > { %1694 = vpow2.f32 %v1137_v16  ;;  %v656_v10 = vpop.f32.mrf.mxu0  ;;  %v1671_v22 = vpop.eup %1670  ;;  %1158 = vst [vmem:[%s2264_s6 + $0x68] sm:$0xff] %v1669_v20 }
 0x13e   : > { %1696 = vpow2.f32 %v1097_v31  ;;  %v1099_v23 = vmul.f32 1.442695, %v1026_v19  ;;  %v1028_v24 = vsub.f32 %v963_v17, %v2206_v28  ;;  %v964_v25 = vsub.f32 %v656_v10, %v2228_v1  ;;  %v1673_v26 = vpop.eup %1672  ;;  %1171 = vst [vmem:[%s2264_s6 + $0xd0] sm:$0xff] %v1671_v22 }
 0x13f   : > { %v660_v30 = vpop.f32.mrf.mxu0  ;;  %v1675_v34 = vpop.eup %1674  ;;  %1160 = vst [vmem:[%s2264_s6 + $0x78] sm:$0xff] %v1673_v26 }
 0x140   : > { %1698 = vpow2.f32 %v1099_v23  ;;  %v1103_v35 = vmul.f32 1.442695, %v1028_v24  ;;  %v1029_v36 = vsub.f32 %v964_v25, %v2212_v33  ;;  %v966_v38 = vsub.f32 %v660_v30, %v2255_v43  ;;  %v1677_v39 = vpop.eup %1676  ;;  %1180 = vst [vmem:[%s2264_s6 + $0x118] sm:$0xff] %v1675_v34 }
 0x141   : > { %v662_v41 = vpop.f32.mrf.mxu0  ;;  %v1679_v42 = vpop.eup %1678  ;;  %1161 = vst [vmem:[%s2264_s6 + $0x80] sm:$0xff] %v1677_v39 }
 0x142   : > { %1700 = vpow2.f32 %v1103_v35  ;;  %v1105_v1 = vmul.f32 1.442695, %v1029_v36  ;;  %v1031_v21 = vsub.f32 %v966_v38, %v2206_v28  ;;  %v967_v44 = vsub.f32 %v662_v41, %v2255_v43  ;;  %v1681_v45 = vpop.eup %1680  ;;  %1177 = vst [vmem:[%s2264_s6 + $0x100] sm:$0xff] %v1679_v42 }
 0x143   : > { %v666_v48 = vpop.f32.mrf.mxu0  ;;  %v1683_v46 = vpop.eup %1682  ;;  %1163 = vst [vmem:[%s2264_s6 + $0x90] sm:$0xff] %v1681_v45 }
 0x144   : > { %1702 = vpow2.f32 %v1105_v1  ;;  %v1109_v47 = vmul.f32 1.442695, %v1031_v21  ;;  %v1032_v50 = vsub.f32 %v967_v44, %v2212_v33  ;;  %v969_v51 = vsub.f32 %v666_v48, %v2249_v32  ;;  %v1685_v52 = vpop.eup %1684  ;;  %1186 = vst [vmem:[%s2264_s6 + $0x148] sm:$0xff] %v1683_v46 }
 0x145   : > { %v668_v53 = vpop.f32.mrf.mxu0  ;;  %v1687_v54 = vpop.eup %1686  ;;  %1164 = vst [vmem:[%s2264_s6 + $0x98] sm:$0xff] %v1685_v52 }
 0x146   : > { %1704 = vpow2.f32 %v1109_v47  ;;  %v1111_v43 = vmul.f32 1.442695, %v1032_v50  ;;  %v1034_v55 = vsub.f32 %v969_v51, %v2206_v28  ;;  %v970_v56 = vsub.f32 %v668_v53, %v2249_v32  ;;  %v1689_v57 = vpop.eup %1688  ;;  %1183 = vst [vmem:[%s2264_s6 + $0x130] sm:$0xff] %v1687_v54 }
 0x147   : > { %v672_v58 = vpop.f32.mrf.mxu0  ;;  %v1691_v29 = vpop.eup %1690  ;;  %1166 = vst [vmem:[%s2264_s6 + $0xa8] sm:$0xff] %v1689_v57 }
 0x148   : > { %1706 = vpow2.f32 %v1111_v43  ;;  %v1115_v59 = vmul.f32 1.442695, %v1034_v55  ;;  %v1035_v60 = vsub.f32 %v970_v56, %v2212_v33  ;;  %v972_v62 = vsub.f32 %v672_v58, %v2277_v9  ;;  %1192 = vst [vmem:[%s2264_s6 + $0x178] sm:$0xff] %v1691_v29 }
 0x149   : > { %v1693_v63 = vpop.eup %1692  ;;  %v674_v0 = vpop.f32.mrf.mxu0 }
 0x14a   : > { %v1695_v2 = vpop.eup %1694  ;;  %1167 = vst [vmem:[%s2264_s6 + $0xb0] sm:$0xff] %v1693_v63  ;;  %1708 = vpow2.f32 %v1115_v59  ;;  %v1117_v32 = vmul.f32 1.442695, %v1035_v60  ;;  %v1037_v3 = vsub.f32 %v972_v62, %v2206_v28  ;;  %v973_v4 = vsub.f32 %v674_v0, %v2277_v9 }
 0x14b   : > { %v1697_v40 = vpop.eup %1696  ;;  %1189 = vst [vmem:[%s2264_s6 + $0x160] sm:$0xff] %v1695_v2  ;;  %v678_v5 = vpop.f32.mrf.mxu0 }
 0x14c   : > { %1169 = vst [vmem:[%s2264_s6 + $0xc0] sm:$0xff] %v1697_v40  ;;  %1710 = vpow2.f32 %v1117_v32  ;;  %v1121_v6 = vmul.f32 1.442695, %v1037_v3  ;;  %v1038_v7 = vsub.f32 %v973_v4, %v2212_v33  ;;  %v975_v8 = vsub.f32 %v678_v5, %v2269_v61 }
 0x14d   : > { %v1699_v11 = vpop.eup %1698  ;;  %v680_v12 = vpop.f32.mrf.mxu0 }
 0x14e   : > { %1170 = vst [vmem:[%s2264_s6 + $0xc8] sm:$0xff] %v1699_v11  ;;  %1712 = vpow2.f32 %v1121_v6  ;;  %v1123_v13 = vmul.f32 1.442695, %v1038_v7  ;;  %v1040_v14 = vsub.f32 %v975_v8, %v2206_v28  ;;  %v976_v9 = vsub.f32 %v680_v12, %v2269_v61 }
 0x14f   : > { %v1701_v15 = vpop.eup %1700  ;;  %v684_v16 = vpop.f32.mrf.mxu0 }
 0x150   : > { %1172 = vst [vmem:[%s2264_s6 + $0xd8] sm:$0xff] %v1701_v15  ;;  %1714 = vpow2.f32 %v1123_v13  ;;  %v1127_v18 = vmul.f32 1.442695, %v1040_v14  ;;  %v1041_v27 = vsub.f32 %v976_v9, %v2212_v33  ;;  %v978_v31 = vsub.f32 %v684_v16, %v2299_v49 }
 0x151   : > { %v1703_v19 = vpop.eup %1702  ;;  %v686_v17 = vpop.f32.mrf.mxu0 }
 0x152   : > { %1173 = vst [vmem:[%s2264_s6 + $0xe0] sm:$0xff] %v1703_v19  ;;  %1716 = vpow2.f32 %v1127_v18  ;;  %v1129_v20 = vmul.f32 1.442695, %v1041_v27  ;;  %v1043_v10 = vsub.f32 %v978_v31, %v2206_v28  ;;  %v979_v61 = vsub.f32 %v686_v17, %v2299_v49 }
 0x153   : > { %v1705_v22 = vpop.eup %1704  ;;  %v690_v23 = vpop.f32.mrf.mxu0 }
 0x154   : > { %1175 = vst [vmem:[%s2264_s6 + $0xf0] sm:$0xff] %v1705_v22  ;;  %1718 = vpow2.f32 %v1129_v20  ;;  %v1133_v24 = vmul.f32 1.442695, %v1043_v10  ;;  %v1044_v25 = vsub.f32 %v979_v61, %v2212_v33  ;;  %v981_v26 = vsub.f32 %v690_v23, %v2291_v37 }
 0x155   : > { %v1707_v30 = vpop.eup %1706  ;;  %v692_v34 = vpop.f32.mrf.mxu0 }
 0x156   : > { %1176 = vst [vmem:[%s2264_s6 + $0xf8] sm:$0xff] %v1707_v30  ;;  %1720 = vpow2.f32 %v1133_v24  ;;  %v1135_v35 = vmul.f32 1.442695, %v1044_v25  ;;  %v1046_v49 = vsub.f32 %v981_v26, %v2206_v28  ;;  %v982_v36 = vsub.f32 %v692_v34, %v2291_v37 }
 0x157   : > { %v1709_v38 = vpop.eup %1708 }
 0x158   : > { %1178 = vst [vmem:[%s2264_s6 + $0x108] sm:$0xff] %v1709_v38  ;;  %1722 = vpow2.f32 %v1135_v35  ;;  %v1139_v39 = vmul.f32 1.442695, %v1046_v49  ;;  %v1047_v41 = vsub.f32 %v982_v36, %v2212_v33 }
 0x159   : > { %v1711_v42 = vpop.eup %1710 }
 0x15a   : > { %1179 = vst [vmem:[%s2264_s6 + $0x110] sm:$0xff] %v1711_v42  ;;  %1724 = vpow2.f32 %v1139_v39  ;;  %v1141_v1 = vmul.f32 1.442695, %v1047_v41 }
 0x15b   : > { %v1713_v21 = vpop.eup %1712 }
 0x15c   : > { %1181 = vst [vmem:[%s2264_s6 + $0x120] sm:$0xff] %v1713_v21  ;;  %1726 = vpow2.f32 %v1141_v1 }
 0x15d   : > { %v1715_v28 = vpop.eup %1714 }
 0x15e   : > { %1182 = vst [vmem:[%s2264_s6 + $0x128] sm:$0xff] %v1715_v28 }
 0x15f   : > { %v1717_v37 = vpop.eup %1716 }
 0x160   : > { %1184 = vst [vmem:[%s2264_s6 + $0x138] sm:$0xff] %v1717_v37 }
 0x161   : > { %v1719_v44 = vpop.eup %1718 }
 0x162   : > { %1185 = vst [vmem:[%s2264_s6 + $0x140] sm:$0xff] %v1719_v44 }
 0x163   : > { %v1721_v33 = vpop.eup %1720 }
 0x164   : > { %1187 = vst [vmem:[%s2264_s6 + $0x150] sm:$0xff] %v1721_v33 }
 0x165   : > { %v1723_v45 = vpop.eup %1722 }
 0x166   : > { %1188 = vst [vmem:[%s2264_s6 + $0x158] sm:$0xff] %v1723_v45 }
 0x167   : > { %v1725_v48 = vpop.eup %1724 }
 0x168   : > { %1190 = vst [vmem:[%s2264_s6 + $0x168] sm:$0xff] %v1725_v48 }
 0x169   : > { %v1727_v46 = vpop.eup %1726 }
 0x16a   : > { %1191 = vst [vmem:[%s2264_s6 + $0x170] sm:$0xff] %v1727_v46 }
 0x16b   : > { %1741 = shalt.err (!%p1738_p5)
}
 0x16c   : > { %s1742_s26 = scalar_lea.hbm %s2383_s12, 6144  ;;  %s1746_s29 = scalar_lea.hbm %s2440_s4, 12288 }
 0x16d   : > { %p1743_p6 = scmp.ne.s32.totalorder %s2383_s12, %s1742_s26  ;;  %p1747_p10 = scmp.lt.s32.totalorder %s2383_s12, %s2440_s4 }
 0x16e   : > { %p1748_p11 = scmp.lt.s32.totalorder %s1746_s29, %s1742_s26 }
 0x16f   : > { %p1744_p7 = pnand %p1743_p6, %p1875_p4 }
 0x170   : > { %p1749_p12 = por %p1748_p11, %p1747_p10 }
 0x171   : > { %p1745_p9 = pneg %p1744_p7 }
 0x173   : > { %p1750_p13 = pnand %p1749_p12, %p1745_p9 }
 0x175   : > { %1753 = shalt.err (!%p1750_p13)
}
 0x176   : > { %s1808_s6 = smov 384   ;;  %s1809_s7 = smov 24  }
 0x177   : > { %1572 = dma.vmem_to_hbm [thread:$0]  (%p1875_p4), %s2385_s8, 6144, %s2383_s12, %s2391_s18, %s1808_s6, %s1808_s6, %s1809_s7  }
 0x178 PF: > { %p1578_p0 = scmp.ge.s32.totalorder %s1804_s20, 2  ;;  %s1225_s14 = sand.u32 1, %s1784_s15  }
 0x179   : > { %s1226_s10 = scalar_lea.sflag [#allocation3], %s1225_s14 }
 0x17a   : > { %p1575_p1 = pnand %p1578_p0, %p1882_p8 }
 0x17c   : > { %p1576_p2 = pneg %p1575_p1 }
 0x17e   : > { %1779 = dma.done.wait (%p1576_p2), %s1226_s10, 6144  }
 0x17f   : > { %1781 = vsyncadd (%p1576_p2), %s1226_s10, 4294961152  ;;  %s17_s20 = sadd.s32 1, %s1804_s20   ;;  %s2443_s15 = smov %s1788_s16 }
 0x180   : > { %p14_p3 = scmp.ge.s32.totalorder %s17_s20, 4   ;;  %s2444_s16 = smov %s1792_s17 }
 0x181   : > { %s2445_s17 = smov %s1888_s28  ;;  %s2446_s18 = smov %s1800_s19 }
 0x182   : > { %s2447_s19 = smov %s2449_s23  ;;  %16 = sbr.rel (!%p14_p3) target bundleno = 4 (0x4), region = 80 }
 0x187   :  { %1231 = vsyncpa [#allocation3], 1 }
 0x188   :  { %1233 = vsyncpa [#allocation3 + $0x1], 1 }

</bundles_post_ra>
